<compile_context>
chip_gen: v7x
topology: tpu7x:2x2x1
jax: 0.10.0
libtpu: 0.0.40
codegen_flags: <defaults>
</compile_context>

<pallas_src>
import jax
import jax.numpy as jnp
from jax.experimental import pallas as pl
from jax.experimental.pallas import tpu as pltpu


def clip_embedding_kernel(tok_ref, emb_hbm, pos_ref, out_ref, gather_buf, sem):
    # tok_ref:    (B, S) int32 in SMEM (scalar prefetch)
    # emb_hbm:    (V, D) float32 raw HBM ref (memory_space=pl.ANY)
    # pos_ref:    (S, D) float32 in VMEM (grid-invariant)
    # out_ref:    (1, S, D) float32 VMEM output block for batch element b
    # gather_buf: (S, D) float32 VMEM scratch (DMA gather landing zone)
    # sem:        (S,) DMA semaphores, one per outstanding row copy
    b = pl.program_id(0)
    S = out_ref.shape[1]
    V = emb_hbm.shape[0]

    # Issue all S row-gather DMAs back-to-back so they are all in flight at once.
    # S is a small static trip count -> fully unrolled, descriptors kept to wait on.
    copies = []
    for s in range(S):
        tok = tok_ref[b, s]                       # scalar int32 read from SMEM
        tok = jnp.clip(tok, 0, V - 1)             # no HW bounds check: clamp
        cp = pltpu.make_async_copy(
            emb_hbm.at[pl.ds(tok, 1), :],         # (1, D) row in HBM
            gather_buf.at[pl.ds(s, 1), :],        # (1, D) slot in VMEM scratch
            sem.at[s],
        )
        cp.start()
        copies.append(cp)

    # Wait for every gathered row to land.
    for cp in copies:
        cp.wait()

    # One vectorized positional add + one lane-dense (S, D) store.
    out_ref[0] = gather_buf[...] + pos_ref[...]


def clip_embedding(tokens, emb_table, pos_enc):
    """tokens: (B, S) int; emb_table: (V, D) f32; pos_enc: (S, D) f32 -> (B, S, D) f32."""
    B, S = tokens.shape
    V, D = emb_table.shape
    assert pos_enc.shape == (S, D), "seq len must match max_seq_len (torch broadcast add)"

    grid_spec = pltpu.PrefetchScalarGridSpec(
        num_scalar_prefetch=1,
        grid=(B,),
        in_specs=[
            # Embedding table stays in HBM; rows are gathered with manual DMAs.
            pl.BlockSpec(memory_space=pl.ANY),
            # Positional encoding: small grid-invariant VMEM-resident input.
            pl.BlockSpec((S, D), lambda b, tok: (0, 0)),
        ],
        out_specs=pl.BlockSpec((1, S, D), lambda b, tok: (b, 0, 0)),
        scratch_shapes=[
            pltpu.VMEM((S, D), emb_table.dtype),   # gather landing buffer
            pltpu.SemaphoreType.DMA((S,)),         # one sem per outstanding row DMA
        ],
    )

    return pl.pallas_call(
        clip_embedding_kernel,
        out_shape=jax.ShapeDtypeStruct((B, S, D), emb_table.dtype),
        grid_spec=grid_spec,
        compiler_params=pltpu.CompilerParams(
            # Batch elements are fully independent -> shard the grid across TCs (v7x).
            dimension_semantics=("parallel",),
        ),
    )(tokens.astype(jnp.int32), emb_table, pos_enc)


if __name__ == "__main__":
    # Small shapes consistent with CLIPEmbedding(voc_size, embedding_dim, max_seq_len).
    # D = 128 keeps the row DMAs and the output store lane-dense.
    B, S, V, D = 2, 8, 64, 128

    key = jax.random.PRNGKey(0)
    k_tok, k_emb, k_pos = jax.random.split(key, 3)

    tokens = jax.random.randint(k_tok, (B, S), minval=0, maxval=V, dtype=jnp.int32)
    # nn.Embedding default init ~ N(0,1); positional_encoding is zero-initialised in the
    # module — use small random values so the add path is actually exercised.
    emb_table = jax.random.normal(k_emb, (V, D), dtype=jnp.float32)
    pos_enc = 0.01 * jax.random.normal(k_pos, (S, D), dtype=jnp.float32)

    out = clip_embedding(tokens, emb_table, pos_enc)
    out = jax.block_until_ready(out)

    # Pure-JAX reference of the PyTorch forward.
    ref = emb_table[tokens] + pos_enc[None, :, :]

    assert out.shape == (B, S, D)
    assert out.dtype == jnp.float32
    assert jnp.allclose(out, ref, atol=1e-6, rtol=1e-6), "mismatch vs reference"

    print("KERNEL_OK")
</pallas_src>

<mosaic_0001>
module attributes {stable_mosaic.version = 11 : i64} {
  func.func @clip_embedding_kernel(%arg0: i32, %arg1: memref<2x8xi32, #tpu.memory_space<smem>>, %arg2: memref<64x128xf32, #tpu.memory_space<any>>, %arg3: memref<8x128xf32, #tpu.memory_space<vmem>>, %arg4: memref<1x8x128xf32, #tpu.memory_space<vmem>>, %arg5: memref<8x128xf32, #tpu.memory_space<vmem>>, %arg6: memref<8x!tpu.dma_semaphore, #tpu.memory_space<semaphore_mem>>) attributes {dimension_semantics = [#tpu.dimension_semantics<parallel>], iteration_bounds = array<i64: 2>, scalar_prefetch = 1 : i64, scratch_operands = 2 : i64, tpu.core_type = #tpu.core_type<tc>, window_params = [{}, {pipeline_mode = #tpu.pipeline_mode<synchronous>, transform_indices = @transform_1, window_bounds = array<i64: 8, 128>}, {transform_indices = @transform_2, window_bounds = array<i64: 1, 8, 128>}]} {
    %0 = arith.index_cast %arg0 : i32 to index
    %c0 = arith.constant 0 : index
    %1 = memref.load %arg1[%0, %c0] : memref<2x8xi32, #tpu.memory_space<smem>>
    %c0_i32 = arith.constant 0 : i32
    %c63_i32 = arith.constant 63 : i32
    %2 = arith.maxsi %c0_i32, %1 : i32
    %3 = arith.minsi %c63_i32, %2 : i32
    %c0_i32_0 = arith.constant 0 : i32
    %c0_i32_1 = arith.constant 0 : i32
    %4 = tpu.memref_slice %arg2[%3, %c0_i32_1] : memref<64x128xf32, #tpu.memory_space<any>> -> memref<1x128xf32, #tpu.memory_space<any>>
    %c0_i32_2 = arith.constant 0 : i32
    %c0_i32_3 = arith.constant 0 : i32
    %5 = tpu.memref_slice %arg5[%c0_i32_2, %c0_i32_3] : memref<8x128xf32, #tpu.memory_space<vmem>> -> memref<1x128xf32, #tpu.memory_space<vmem>>
    %6 = tpu.memref_slice %arg6[%c0_i32_0] : memref<8x!tpu.dma_semaphore, #tpu.memory_space<semaphore_mem>> -> memref<1x!tpu.dma_semaphore, #tpu.memory_space<semaphore_mem>>
    %7 = tpu.memref_squeeze %6 : memref<1x!tpu.dma_semaphore, #tpu.memory_space<semaphore_mem>> -> memref<!tpu.dma_semaphore, #tpu.memory_space<semaphore_mem>>
    tpu.enqueue_dma source(%4 : memref<1x128xf32, #tpu.memory_space<any>>) target(%5 : memref<1x128xf32, #tpu.memory_space<vmem>>) target_semaphore(%7 : memref<!tpu.dma_semaphore, #tpu.memory_space<semaphore_mem>>)
    %8 = arith.index_cast %arg0 : i32 to index
    %c1 = arith.constant 1 : index
    %9 = memref.load %arg1[%8, %c1] : memref<2x8xi32, #tpu.memory_space<smem>>
    %c0_i32_4 = arith.constant 0 : i32
    %c63_i32_5 = arith.constant 63 : i32
    %10 = arith.maxsi %c0_i32_4, %9 : i32
    %11 = arith.minsi %c63_i32_5, %10 : i32
    %c1_i32 = arith.constant 1 : i32
    %c0_i32_6 = arith.constant 0 : i32
    %12 = tpu.memref_slice %arg2[%11, %c0_i32_6] : memref<64x128xf32, #tpu.memory_space<any>> -> memref<1x128xf32, #tpu.memory_space<any>>
    %c1_i32_7 = arith.constant 1 : i32
    %c0_i32_8 = arith.constant 0 : i32
    %13 = tpu.memref_slice %arg5[%c1_i32_7, %c0_i32_8] : memref<8x128xf32, #tpu.memory_space<vmem>> -> memref<1x128xf32, #tpu.memory_space<vmem>>
    %14 = tpu.memref_slice %arg6[%c1_i32] : memref<8x!tpu.dma_semaphore, #tpu.memory_space<semaphore_mem>> -> memref<1x!tpu.dma_semaphore, #tpu.memory_space<semaphore_mem>>
    %15 = tpu.memref_squeeze %14 : memref<1x!tpu.dma_semaphore, #tpu.memory_space<semaphore_mem>> -> memref<!tpu.dma_semaphore, #tpu.memory_space<semaphore_mem>>
    tpu.enqueue_dma source(%12 : memref<1x128xf32, #tpu.memory_space<any>>) target(%13 : memref<1x128xf32, #tpu.memory_space<vmem>>) target_semaphore(%15 : memref<!tpu.dma_semaphore, #tpu.memory_space<semaphore_mem>>)
    %16 = arith.index_cast %arg0 : i32 to index
    %c2 = arith.constant 2 : index
    %17 = memref.load %arg1[%16, %c2] : memref<2x8xi32, #tpu.memory_space<smem>>
    %c0_i32_9 = arith.constant 0 : i32
    %c63_i32_10 = arith.constant 63 : i32
    %18 = arith.maxsi %c0_i32_9, %17 : i32
    %19 = arith.minsi %c63_i32_10, %18 : i32
    %c2_i32 = arith.constant 2 : i32
    %c0_i32_11 = arith.constant 0 : i32
    %20 = tpu.memref_slice %arg2[%19, %c0_i32_11] : memref<64x128xf32, #tpu.memory_space<any>> -> memref<1x128xf32, #tpu.memory_space<any>>
    %c2_i32_12 = arith.constant 2 : i32
    %c0_i32_13 = arith.constant 0 : i32
    %21 = tpu.memref_slice %arg5[%c2_i32_12, %c0_i32_13] : memref<8x128xf32, #tpu.memory_space<vmem>> -> memref<1x128xf32, #tpu.memory_space<vmem>>
    %22 = tpu.memref_slice %arg6[%c2_i32] : memref<8x!tpu.dma_semaphore, #tpu.memory_space<semaphore_mem>> -> memref<1x!tpu.dma_semaphore, #tpu.memory_space<semaphore_mem>>
    %23 = tpu.memref_squeeze %22 : memref<1x!tpu.dma_semaphore, #tpu.memory_space<semaphore_mem>> -> memref<!tpu.dma_semaphore, #tpu.memory_space<semaphore_mem>>
    tpu.enqueue_dma source(%20 : memref<1x128xf32, #tpu.memory_space<any>>) target(%21 : memref<1x128xf32, #tpu.memory_space<vmem>>) target_semaphore(%23 : memref<!tpu.dma_semaphore, #tpu.memory_space<semaphore_mem>>)
    %24 = arith.index_cast %arg0 : i32 to index
    %c3 = arith.constant 3 : index
    %25 = memref.load %arg1[%24, %c3] : memref<2x8xi32, #tpu.memory_space<smem>>
    %c0_i32_14 = arith.constant 0 : i32
    %c63_i32_15 = arith.constant 63 : i32
    %26 = arith.maxsi %c0_i32_14, %25 : i32
    %27 = arith.minsi %c63_i32_15, %26 : i32
    %c3_i32 = arith.constant 3 : i32
    %c0_i32_16 = arith.constant 0 : i32
    %28 = tpu.memref_slice %arg2[%27, %c0_i32_16] : memref<64x128xf32, #tpu.memory_space<any>> -> memref<1x128xf32, #tpu.memory_space<any>>
    %c3_i32_17 = arith.constant 3 : i32
    %c0_i32_18 = arith.constant 0 : i32
    %29 = tpu.memref_slice %arg5[%c3_i32_17, %c0_i32_18] : memref<8x128xf32, #tpu.memory_space<vmem>> -> memref<1x128xf32, #tpu.memory_space<vmem>>
    %30 = tpu.memref_slice %arg6[%c3_i32] : memref<8x!tpu.dma_semaphore, #tpu.memory_space<semaphore_mem>> -> memref<1x!tpu.dma_semaphore, #tpu.memory_space<semaphore_mem>>
    %31 = tpu.memref_squeeze %30 : memref<1x!tpu.dma_semaphore, #tpu.memory_space<semaphore_mem>> -> memref<!tpu.dma_semaphore, #tpu.memory_space<semaphore_mem>>
    tpu.enqueue_dma source(%28 : memref<1x128xf32, #tpu.memory_space<any>>) target(%29 : memref<1x128xf32, #tpu.memory_space<vmem>>) target_semaphore(%31 : memref<!tpu.dma_semaphore, #tpu.memory_space<semaphore_mem>>)
    %32 = arith.index_cast %arg0 : i32 to index
    %c4 = arith.constant 4 : index
    %33 = memref.load %arg1[%32, %c4] : memref<2x8xi32, #tpu.memory_space<smem>>
    %c0_i32_19 = arith.constant 0 : i32
    %c63_i32_20 = arith.constant 63 : i32
    %34 = arith.maxsi %c0_i32_19, %33 : i32
    %35 = arith.minsi %c63_i32_20, %34 : i32
    %c4_i32 = arith.constant 4 : i32
    %c0_i32_21 = arith.constant 0 : i32
    %36 = tpu.memref_slice %arg2[%35, %c0_i32_21] : memref<64x128xf32, #tpu.memory_space<any>> -> memref<1x128xf32, #tpu.memory_space<any>>
    %c4_i32_22 = arith.constant 4 : i32
    %c0_i32_23 = arith.constant 0 : i32
    %37 = tpu.memref_slice %arg5[%c4_i32_22, %c0_i32_23] : memref<8x128xf32, #tpu.memory_space<vmem>> -> memref<1x128xf32, #tpu.memory_space<vmem>>
    %38 = tpu.memref_slice %arg6[%c4_i32] : memref<8x!tpu.dma_semaphore, #tpu.memory_space<semaphore_mem>> -> memref<1x!tpu.dma_semaphore, #tpu.memory_space<semaphore_mem>>
    %39 = tpu.memref_squeeze %38 : memref<1x!tpu.dma_semaphore, #tpu.memory_space<semaphore_mem>> -> memref<!tpu.dma_semaphore, #tpu.memory_space<semaphore_mem>>
    tpu.enqueue_dma source(%36 : memref<1x128xf32, #tpu.memory_space<any>>) target(%37 : memref<1x128xf32, #tpu.memory_space<vmem>>) target_semaphore(%39 : memref<!tpu.dma_semaphore, #tpu.memory_space<semaphore_mem>>)
    %40 = arith.index_cast %arg0 : i32 to index
    %c5 = arith.constant 5 : index
    %41 = memref.load %arg1[%40, %c5] : memref<2x8xi32, #tpu.memory_space<smem>>
    %c0_i32_24 = arith.constant 0 : i32
    %c63_i32_25 = arith.constant 63 : i32
    %42 = arith.maxsi %c0_i32_24, %41 : i32
    %43 = arith.minsi %c63_i32_25, %42 : i32
    %c5_i32 = arith.constant 5 : i32
    %c0_i32_26 = arith.constant 0 : i32
    %44 = tpu.memref_slice %arg2[%43, %c0_i32_26] : memref<64x128xf32, #tpu.memory_space<any>> -> memref<1x128xf32, #tpu.memory_space<any>>
    %c5_i32_27 = arith.constant 5 : i32
    %c0_i32_28 = arith.constant 0 : i32
    %45 = tpu.memref_slice %arg5[%c5_i32_27, %c0_i32_28] : memref<8x128xf32, #tpu.memory_space<vmem>> -> memref<1x128xf32, #tpu.memory_space<vmem>>
    %46 = tpu.memref_slice %arg6[%c5_i32] : memref<8x!tpu.dma_semaphore, #tpu.memory_space<semaphore_mem>> -> memref<1x!tpu.dma_semaphore, #tpu.memory_space<semaphore_mem>>
    %47 = tpu.memref_squeeze %46 : memref<1x!tpu.dma_semaphore, #tpu.memory_space<semaphore_mem>> -> memref<!tpu.dma_semaphore, #tpu.memory_space<semaphore_mem>>
    tpu.enqueue_dma source(%44 : memref<1x128xf32, #tpu.memory_space<any>>) target(%45 : memref<1x128xf32, #tpu.memory_space<vmem>>) target_semaphore(%47 : memref<!tpu.dma_semaphore, #tpu.memory_space<semaphore_mem>>)
    %48 = arith.index_cast %arg0 : i32 to index
    %c6 = arith.constant 6 : index
    %49 = memref.load %arg1[%48, %c6] : memref<2x8xi32, #tpu.memory_space<smem>>
    %c0_i32_29 = arith.constant 0 : i32
    %c63_i32_30 = arith.constant 63 : i32
    %50 = arith.maxsi %c0_i32_29, %49 : i32
    %51 = arith.minsi %c63_i32_30, %50 : i32
    %c6_i32 = arith.constant 6 : i32
    %c0_i32_31 = arith.constant 0 : i32
    %52 = tpu.memref_slice %arg2[%51, %c0_i32_31] : memref<64x128xf32, #tpu.memory_space<any>> -> memref<1x128xf32, #tpu.memory_space<any>>
    %c6_i32_32 = arith.constant 6 : i32
    %c0_i32_33 = arith.constant 0 : i32
    %53 = tpu.memref_slice %arg5[%c6_i32_32, %c0_i32_33] : memref<8x128xf32, #tpu.memory_space<vmem>> -> memref<1x128xf32, #tpu.memory_space<vmem>>
    %54 = tpu.memref_slice %arg6[%c6_i32] : memref<8x!tpu.dma_semaphore, #tpu.memory_space<semaphore_mem>> -> memref<1x!tpu.dma_semaphore, #tpu.memory_space<semaphore_mem>>
    %55 = tpu.memref_squeeze %54 : memref<1x!tpu.dma_semaphore, #tpu.memory_space<semaphore_mem>> -> memref<!tpu.dma_semaphore, #tpu.memory_space<semaphore_mem>>
    tpu.enqueue_dma source(%52 : memref<1x128xf32, #tpu.memory_space<any>>) target(%53 : memref<1x128xf32, #tpu.memory_space<vmem>>) target_semaphore(%55 : memref<!tpu.dma_semaphore, #tpu.memory_space<semaphore_mem>>)
    %56 = arith.index_cast %arg0 : i32 to index
    %c7 = arith.constant 7 : index
    %57 = memref.load %arg1[%56, %c7] : memref<2x8xi32, #tpu.memory_space<smem>>
    %c0_i32_34 = arith.constant 0 : i32
    %c63_i32_35 = arith.constant 63 : i32
    %58 = arith.maxsi %c0_i32_34, %57 : i32
    %59 = arith.minsi %c63_i32_35, %58 : i32
    %c7_i32 = arith.constant 7 : i32
    %c0_i32_36 = arith.constant 0 : i32
    %60 = tpu.memref_slice %arg2[%59, %c0_i32_36] : memref<64x128xf32, #tpu.memory_space<any>> -> memref<1x128xf32, #tpu.memory_space<any>>
    %c7_i32_37 = arith.constant 7 : i32
    %c0_i32_38 = arith.constant 0 : i32
    %61 = tpu.memref_slice %arg5[%c7_i32_37, %c0_i32_38] : memref<8x128xf32, #tpu.memory_space<vmem>> -> memref<1x128xf32, #tpu.memory_space<vmem>>
    %62 = tpu.memref_slice %arg6[%c7_i32] : memref<8x!tpu.dma_semaphore, #tpu.memory_space<semaphore_mem>> -> memref<1x!tpu.dma_semaphore, #tpu.memory_space<semaphore_mem>>
    %63 = tpu.memref_squeeze %62 : memref<1x!tpu.dma_semaphore, #tpu.memory_space<semaphore_mem>> -> memref<!tpu.dma_semaphore, #tpu.memory_space<semaphore_mem>>
    tpu.enqueue_dma source(%60 : memref<1x128xf32, #tpu.memory_space<any>>) target(%61 : memref<1x128xf32, #tpu.memory_space<vmem>>) target_semaphore(%63 : memref<!tpu.dma_semaphore, #tpu.memory_space<semaphore_mem>>)
    %c0_i32_39 = arith.constant 0 : i32
    %c0_i32_40 = arith.constant 0 : i32
    %64 = tpu.memref_slice %arg2[%3, %c0_i32_40] : memref<64x128xf32, #tpu.memory_space<any>> -> memref<1x128xf32, #tpu.memory_space<any>>
    %c0_i32_41 = arith.constant 0 : i32
    %c0_i32_42 = arith.constant 0 : i32
    %65 = tpu.memref_slice %arg5[%c0_i32_41, %c0_i32_42] : memref<8x128xf32, #tpu.memory_space<vmem>> -> memref<1x128xf32, #tpu.memory_space<vmem>>
    %66 = tpu.memref_slice %arg6[%c0_i32_39] : memref<8x!tpu.dma_semaphore, #tpu.memory_space<semaphore_mem>> -> memref<1x!tpu.dma_semaphore, #tpu.memory_space<semaphore_mem>>
    %67 = tpu.memref_squeeze %66 : memref<1x!tpu.dma_semaphore, #tpu.memory_space<semaphore_mem>> -> memref<!tpu.dma_semaphore, #tpu.memory_space<semaphore_mem>>
    tpu.wait_dma2 semaphore(%67 : memref<!tpu.dma_semaphore, #tpu.memory_space<semaphore_mem>>) src(%64 : memref<1x128xf32, #tpu.memory_space<any>>) dst(%65 : memref<1x128xf32, #tpu.memory_space<vmem>>)
    %c1_i32_43 = arith.constant 1 : i32
    %c0_i32_44 = arith.constant 0 : i32
    %68 = tpu.memref_slice %arg2[%11, %c0_i32_44] : memref<64x128xf32, #tpu.memory_space<any>> -> memref<1x128xf32, #tpu.memory_space<any>>
    %c1_i32_45 = arith.constant 1 : i32
    %c0_i32_46 = arith.constant 0 : i32
    %69 = tpu.memref_slice %arg5[%c1_i32_45, %c0_i32_46] : memref<8x128xf32, #tpu.memory_space<vmem>> -> memref<1x128xf32, #tpu.memory_space<vmem>>
    %70 = tpu.memref_slice %arg6[%c1_i32_43] : memref<8x!tpu.dma_semaphore, #tpu.memory_space<semaphore_mem>> -> memref<1x!tpu.dma_semaphore, #tpu.memory_space<semaphore_mem>>
    %71 = tpu.memref_squeeze %70 : memref<1x!tpu.dma_semaphore, #tpu.memory_space<semaphore_mem>> -> memref<!tpu.dma_semaphore, #tpu.memory_space<semaphore_mem>>
    tpu.wait_dma2 semaphore(%71 : memref<!tpu.dma_semaphore, #tpu.memory_space<semaphore_mem>>) src(%68 : memref<1x128xf32, #tpu.memory_space<any>>) dst(%69 : memref<1x128xf32, #tpu.memory_space<vmem>>)
    %c2_i32_47 = arith.constant 2 : i32
    %c0_i32_48 = arith.constant 0 : i32
    %72 = tpu.memref_slice %arg2[%19, %c0_i32_48] : memref<64x128xf32, #tpu.memory_space<any>> -> memref<1x128xf32, #tpu.memory_space<any>>
    %c2_i32_49 = arith.constant 2 : i32
    %c0_i32_50 = arith.constant 0 : i32
    %73 = tpu.memref_slice %arg5[%c2_i32_49, %c0_i32_50] : memref<8x128xf32, #tpu.memory_space<vmem>> -> memref<1x128xf32, #tpu.memory_space<vmem>>
    %74 = tpu.memref_slice %arg6[%c2_i32_47] : memref<8x!tpu.dma_semaphore, #tpu.memory_space<semaphore_mem>> -> memref<1x!tpu.dma_semaphore, #tpu.memory_space<semaphore_mem>>
    %75 = tpu.memref_squeeze %74 : memref<1x!tpu.dma_semaphore, #tpu.memory_space<semaphore_mem>> -> memref<!tpu.dma_semaphore, #tpu.memory_space<semaphore_mem>>
    tpu.wait_dma2 semaphore(%75 : memref<!tpu.dma_semaphore, #tpu.memory_space<semaphore_mem>>) src(%72 : memref<1x128xf32, #tpu.memory_space<any>>) dst(%73 : memref<1x128xf32, #tpu.memory_space<vmem>>)
    %c3_i32_51 = arith.constant 3 : i32
    %c0_i32_52 = arith.constant 0 : i32
    %76 = tpu.memref_slice %arg2[%27, %c0_i32_52] : memref<64x128xf32, #tpu.memory_space<any>> -> memref<1x128xf32, #tpu.memory_space<any>>
    %c3_i32_53 = arith.constant 3 : i32
    %c0_i32_54 = arith.constant 0 : i32
    %77 = tpu.memref_slice %arg5[%c3_i32_53, %c0_i32_54] : memref<8x128xf32, #tpu.memory_space<vmem>> -> memref<1x128xf32, #tpu.memory_space<vmem>>
    %78 = tpu.memref_slice %arg6[%c3_i32_51] : memref<8x!tpu.dma_semaphore, #tpu.memory_space<semaphore_mem>> -> memref<1x!tpu.dma_semaphore, #tpu.memory_space<semaphore_mem>>
    %79 = tpu.memref_squeeze %78 : memref<1x!tpu.dma_semaphore, #tpu.memory_space<semaphore_mem>> -> memref<!tpu.dma_semaphore, #tpu.memory_space<semaphore_mem>>
    tpu.wait_dma2 semaphore(%79 : memref<!tpu.dma_semaphore, #tpu.memory_space<semaphore_mem>>) src(%76 : memref<1x128xf32, #tpu.memory_space<any>>) dst(%77 : memref<1x128xf32, #tpu.memory_space<vmem>>)
    %c4_i32_55 = arith.constant 4 : i32
    %c0_i32_56 = arith.constant 0 : i32
    %80 = tpu.memref_slice %arg2[%35, %c0_i32_56] : memref<64x128xf32, #tpu.memory_space<any>> -> memref<1x128xf32, #tpu.memory_space<any>>
    %c4_i32_57 = arith.constant 4 : i32
    %c0_i32_58 = arith.constant 0 : i32
    %81 = tpu.memref_slice %arg5[%c4_i32_57, %c0_i32_58] : memref<8x128xf32, #tpu.memory_space<vmem>> -> memref<1x128xf32, #tpu.memory_space<vmem>>
    %82 = tpu.memref_slice %arg6[%c4_i32_55] : memref<8x!tpu.dma_semaphore, #tpu.memory_space<semaphore_mem>> -> memref<1x!tpu.dma_semaphore, #tpu.memory_space<semaphore_mem>>
    %83 = tpu.memref_squeeze %82 : memref<1x!tpu.dma_semaphore, #tpu.memory_space<semaphore_mem>> -> memref<!tpu.dma_semaphore, #tpu.memory_space<semaphore_mem>>
    tpu.wait_dma2 semaphore(%83 : memref<!tpu.dma_semaphore, #tpu.memory_space<semaphore_mem>>) src(%80 : memref<1x128xf32, #tpu.memory_space<any>>) dst(%81 : memref<1x128xf32, #tpu.memory_space<vmem>>)
    %c5_i32_59 = arith.constant 5 : i32
    %c0_i32_60 = arith.constant 0 : i32
    %84 = tpu.memref_slice %arg2[%43, %c0_i32_60] : memref<64x128xf32, #tpu.memory_space<any>> -> memref<1x128xf32, #tpu.memory_space<any>>
    %c5_i32_61 = arith.constant 5 : i32
    %c0_i32_62 = arith.constant 0 : i32
    %85 = tpu.memref_slice %arg5[%c5_i32_61, %c0_i32_62] : memref<8x128xf32, #tpu.memory_space<vmem>> -> memref<1x128xf32, #tpu.memory_space<vmem>>
    %86 = tpu.memref_slice %arg6[%c5_i32_59] : memref<8x!tpu.dma_semaphore, #tpu.memory_space<semaphore_mem>> -> memref<1x!tpu.dma_semaphore, #tpu.memory_space<semaphore_mem>>
    %87 = tpu.memref_squeeze %86 : memref<1x!tpu.dma_semaphore, #tpu.memory_space<semaphore_mem>> -> memref<!tpu.dma_semaphore, #tpu.memory_space<semaphore_mem>>
    tpu.wait_dma2 semaphore(%87 : memref<!tpu.dma_semaphore, #tpu.memory_space<semaphore_mem>>) src(%84 : memref<1x128xf32, #tpu.memory_space<any>>) dst(%85 : memref<1x128xf32, #tpu.memory_space<vmem>>)
    %c6_i32_63 = arith.constant 6 : i32
    %c0_i32_64 = arith.constant 0 : i32
    %88 = tpu.memref_slice %arg2[%51, %c0_i32_64] : memref<64x128xf32, #tpu.memory_space<any>> -> memref<1x128xf32, #tpu.memory_space<any>>
    %c6_i32_65 = arith.constant 6 : i32
    %c0_i32_66 = arith.constant 0 : i32
    %89 = tpu.memref_slice %arg5[%c6_i32_65, %c0_i32_66] : memref<8x128xf32, #tpu.memory_space<vmem>> -> memref<1x128xf32, #tpu.memory_space<vmem>>
    %90 = tpu.memref_slice %arg6[%c6_i32_63] : memref<8x!tpu.dma_semaphore, #tpu.memory_space<semaphore_mem>> -> memref<1x!tpu.dma_semaphore, #tpu.memory_space<semaphore_mem>>
    %91 = tpu.memref_squeeze %90 : memref<1x!tpu.dma_semaphore, #tpu.memory_space<semaphore_mem>> -> memref<!tpu.dma_semaphore, #tpu.memory_space<semaphore_mem>>
    tpu.wait_dma2 semaphore(%91 : memref<!tpu.dma_semaphore, #tpu.memory_space<semaphore_mem>>) src(%88 : memref<1x128xf32, #tpu.memory_space<any>>) dst(%89 : memref<1x128xf32, #tpu.memory_space<vmem>>)
    %c7_i32_67 = arith.constant 7 : i32
    %c0_i32_68 = arith.constant 0 : i32
    %92 = tpu.memref_slice %arg2[%59, %c0_i32_68] : memref<64x128xf32, #tpu.memory_space<any>> -> memref<1x128xf32, #tpu.memory_space<any>>
    %c7_i32_69 = arith.constant 7 : i32
    %c0_i32_70 = arith.constant 0 : i32
    %93 = tpu.memref_slice %arg5[%c7_i32_69, %c0_i32_70] : memref<8x128xf32, #tpu.memory_space<vmem>> -> memref<1x128xf32, #tpu.memory_space<vmem>>
    %94 = tpu.memref_slice %arg6[%c7_i32_67] : memref<8x!tpu.dma_semaphore, #tpu.memory_space<semaphore_mem>> -> memref<1x!tpu.dma_semaphore, #tpu.memory_space<semaphore_mem>>
    %95 = tpu.memref_squeeze %94 : memref<1x!tpu.dma_semaphore, #tpu.memory_space<semaphore_mem>> -> memref<!tpu.dma_semaphore, #tpu.memory_space<semaphore_mem>>
    tpu.wait_dma2 semaphore(%95 : memref<!tpu.dma_semaphore, #tpu.memory_space<semaphore_mem>>) src(%92 : memref<1x128xf32, #tpu.memory_space<any>>) dst(%93 : memref<1x128xf32, #tpu.memory_space<vmem>>)
    %c0_71 = arith.constant 0 : index
    %c0_72 = arith.constant 0 : index
    %96 = vector.load %arg5[%c0_71, %c0_72] : memref<8x128xf32, #tpu.memory_space<vmem>>, vector<8x128xf32>
    %c0_73 = arith.constant 0 : index
    %c0_74 = arith.constant 0 : index
    %97 = vector.load %arg3[%c0_73, %c0_74] : memref<8x128xf32, #tpu.memory_space<vmem>>, vector<8x128xf32>
    %98 = arith.addf %96, %97 : vector<8x128xf32>
    %c0_75 = arith.constant 0 : index
    %c0_76 = arith.constant 0 : index
    %c0_77 = arith.constant 0 : index
    %99 = vector.load %arg4[%c0_75, %c0_76, %c0_77] : memref<1x8x128xf32, #tpu.memory_space<vmem>>, vector<1x8x128xf32>
    %100 = vector.shape_cast %99 : vector<1x8x128xf32> to vector<8x128xf32>
    %101 = vector.shape_cast %98 : vector<8x128xf32> to vector<1x8x128xf32>
    tpu.vector_store %arg4[%c0_75, %c0_76, %c0_77], %101 {strides = array<i32>} : memref<1x8x128xf32, #tpu.memory_space<vmem>>, vector<1x8x128xf32>,
    return
  }
  func.func @transform_1(%arg0: i32, %arg1: memref<2x8xi32, #tpu.memory_space<smem>>) -> (i32, i32) {
    %c0_i32 = arith.constant 0 : i32
    %c0_i32_0 = arith.constant 0 : i32
    %c0_i32_1 = arith.constant 0 : i32
    return %c0_i32, %c0_i32_0 : i32, i32
  }
  func.func @transform_2(%arg0: i32, %arg1: memref<2x8xi32, #tpu.memory_space<smem>>) -> (i32, i32, i32) {
    %c0_i32 = arith.constant 0 : i32
    %c0_i32_0 = arith.constant 0 : i32
    %c0_i32_1 = arith.constant 0 : i32
    return %arg0, %c0_i32, %c0_i32_0 : i32, i32, i32
  }
}

</mosaic_0001>

<bundles_post_ra>
// kernel: tpu_custom_call.1
= control target key start
LH: loop header
LB: loop body
LE: loop exit
PB: predicated region body
PF: predicated region fallthrough
CT: control target
= control target key end

     0   :  { %s1244_s0 = inlined_call_operand.hbm [shape: s32[2,8], index: 0, kind: input, shape index: {}]   ;;  %s1245_s1 = inlined_call_operand.hbm [shape: f32[64,128], index: 1, kind: input, shape index: {}]   ;;  %s1246_s2 = inlined_call_operand.hbm [shape: f32[8,128], index: 2, kind: input, shape index: {}]   ;;  %s1247_s3 = inlined_call_operand.hbm [shape: f32[2,8,128], index: 3, kind: output, shape index: {}]  }
   0x1   :  { %1252 = sst [smem:[#allocation39_spill]] %s1246_s2  ;;  %s587_s14 = scalar_lea.hbm %s1244_s0, 32 }
   0x2   :  { %p588_p0 = scmp.ne.s32.totalorder %s1244_s0, %s587_s14  ;;  %p591_p1 = scmp.lt.u32.totalorder %s587_s14, %s1244_s0 }
   0x4   :  { %p593_p2 = pnand %p591_p1, %p588_p0 }
   0x6   :  { %596 = shalt.err (!%p593_p2)  }
   0x7   :  { %s903_s19 = smov [#allocation5]  }
   0x8   :  { %9 = dma.hbm_to_smem %s1244_s0, 32, %s903_s19, [#allocation4] }
   0x9   :  { %861 = dma.done.wait [#allocation4], 32 }
   0xa   :  { %862 = vsyncadd [#allocation4], 4294967264 }
   0xb   :  { %11 = sfence }
   0xc   :  { %12 = vsyncpa [#allocation7], 0 }
   0xd   :  { %13 = vsyncpa [#allocation8], 0 }
   0xe   :  { %15 = vsyncpa [#allocation8 + $0x1], 0  ;;  %s946_s22 = smov 0   ;;  %s948_s23 = smov 0  }
   0xf   :  { %s950_s24 = smov 0   ;;  %s952_s25 = smov 0  }
  0x10 LB: > { %s967_s0 = sadd.s32 4294967295, %s901_s25   ;;  %s445_s26 = sadd.s32 4294967294, %s901_s25   ;;  %s901_s25 = sphi %s952_s25, %s1269_s25   ;;  %s897_s24 = sphi %s950_s24, %s1268_s24   ;;  %s893_s23 = sphi %s948_s23, %s1267_s23   ;;  %s889_s22 = sphi %s946_s22, %s1266_s22  }
  0x11   : > { %s971_s27 = sadd.s32 1, %s901_s25   ;;  %s49_s28 = sadd.s32 1, %s897_s24 }
  0x12   : > { %s46_s29 = ssub.s32 %s901_s25, %s971_s27  ;;  %p59_p3 = scmp.ne.s32.totalorder %s897_s24, %s893_s23 }
  0x13   : > { %p47_p4 = scmp.eq.s32.totalorder %s46_s29, 0  ;;  %p60_p5 = scmp.eq.s32.totalorder %s967_s0, 1 }
  0x14   : > { %p65_p6 = scmp.ne.s32.totalorder %s893_s23, %s889_s22  ;;  %p66_p7 = scmp.eq.s32.totalorder %s445_s26, 1 }
  0x15   : > { %s982_s30 = scalar_select %p47_p4, %s897_s24, %s49_s28  }
  0x16   : > { %p984_p8 = por %p60_p5, %p59_p3  ;;  %p988_p9 = por %p66_p7, %p65_p6 }
  0x17   : > { %p446_p10 = scmp.ge.s32.totalorder %s901_s25, 1  ;;  %p73_p11 = scmp.lt.s32.totalorder %s901_s25, 3 }
  0x18   : > { %s1253_s4 = scalar_select %p984_p8, 1, 0 }
  0x19   : > { %s1254_s5 = scalar_select %p988_p9, 1, 0 }
  0x1a   : > { %p1248_p12 = scmp.eq.s32.totalorder %s967_s0, 0  ;;  %p995_p13 = pnand %p446_p10, %p73_p11 }
  0x1b   : > { %s904_s7 = smov [#allocation6]   ;;  %s1257_s2 = sld [smem:[#allocation39_spill]] }
  0x1c   : > { %s1255_s6 = scalar_select %p995_p13, 1, 0 }
  0x1d   : > { %s86_s8 = sshll.u32 %s904_s7, 4  ;;  %p534_p0 = pneg %p995_p13  ;;  %s87_s8 = int_to_ptr.vmem [resolvable:$true] %s86_s8 }
  0x1f   : > { %p1003_p1 = pnand %p1248_p12, %p534_p0 }
  0x21   : > { %s597_s12 = scalar_lea.hbm %s1257_s2, 128  ;;  %p599_p3 = pneg %p1003_p1 }
  0x22   : > { %p598_p2 = scmp.ne.s32.totalorder %s1257_s2, %s597_s12  ;;  %p604_p6 = scmp.lt.u32.totalorder %s597_s12, %s1257_s2 }
  0x24   : > { %p600_p4 = pnand %p599_p3, %p598_p2 }
  0x26   : > { %p601_p5 = pneg %p600_p4 }
  0x28   : > { %p606_p7 = pnand %p604_p6, %p601_p5 }
  0x2a   : > { %609 = shalt.err (!%p606_p7)
}
  0x2b   : > { %s610_s17 = scalar_lea.vmem %s87_s8, 128  ;;  %p618_p12 = scmp.lt.s32.totalorder %s87_s8, %s87_s8 }
  0x2c   : > { %p611_p10 = scmp.ne.s32.totalorder %s87_s8, %s610_s17  ;;  %p619_p9 = scmp.lt.s32.totalorder %s610_s17, %s610_s17 }
  0x2e   : > { %p613_p11 = pnand %p611_p10, %p599_p3  ;;  %p620_p8 = por %p619_p9, %p618_p12 }
  0x30   : > { %p614_p0 = pneg %p613_p11 }
  0x32   : > { %p621_p13 = pnand %p620_p8, %p614_p0 }
  0x34   : > { %624 = shalt.err (!%p621_p13)
}
  0x35   : > { %537 = dma.hbm_to_vmem [thread:$0]  (!%p1003_p1), %s1257_s2, 128, %s87_s8, [#allocation7]  }
  0x36   : > { %p1258_p2 = scmp.ne.s32.totalorder %s1255_s6, 0 }
  0x37   : > { %p1259_p4 = scmp.eq.s32.totalorder (!%p1258_p2), %s967_s0, 0 }
  0x38   : > { %99 = sbr.rel (%p1258_p2) target bundleno = 314 (0x13a), region = 24 }
  0x3f   : > { %864 = dma.done.wait (%p1259_p4), [#allocation7], 128   ;;  %p1260_p3 = pmov %p1259_p4 }
  0x40   : > { %s1251_s20 = sand.u32 1, %s893_s23   ;;  %s1031_s21 = sshll.u32 %s967_s0, 7 }
  0x41   : > { %866 = vsyncadd (%p1260_p3), [#allocation7], 4294967168  ;;  %s1035_s26 = sshll.u32 %s1251_s20, 3  ;;  %s115_s28 = sld [smem:[#allocation5 + %s1031_s21]] }
  0x42   : > { %s905_s29 = smov [#allocation2]   ;;  %s133_s7 = sadd.s32 1, %s1031_s21 }
  0x43   : > { %s129_s6 = sshll.u32 %s905_s29, 4  ;;  %s1041_s8 = sld [smem:[#allocation5 + %s133_s7]]  ;;  %s1039_s6 = int_to_ptr.vmem [resolvable:$true] %s129_s6 }
  0x44   : > { %s154_s9 = sadd.s32 2, %s1031_s21  ;;  %s906_s0 = smov [#allocation2 + $0x1]  }
  0x45   : > { %s150_s10 = sshll.u32 %s906_s0, 4  ;;  %s1044_s11 = sld [smem:[#allocation5 + %s154_s9]]  ;;  %s1046_s10 = int_to_ptr.vmem [resolvable:$true] %s150_s10 }
  0x46   : > { %s1059_s29 = scalar_lea.hbm %s1245_s1, 1024 }
  0x47   : > { %p116_p8 = scmp.gt.s32.totalorder %s115_s28, 0  ;;  %p452_p9 = scmp.lt.s32.totalorder %s115_s28, 63 }
  0x49   : > { %s1271_s28 = smov (!%p116_p8, %s115_s28), 0  ;;  %p135_p12 = scmp.gt.s32.totalorder %s1041_s8, 0 }
  0x4a   : > { %p458_p13 = scmp.lt.s32.totalorder %s1041_s8, 63  ;;  %s1273_s28 = smov (!%p452_p9, %s1271_s28), 63 }
  0x4b   : > { %s136_s12 = scalar_select %p135_p12, %s1041_s8, 0 }
  0x4c   : > { %s457_s13 = sshll.u32 %s1273_s28, 4  ;;  %p156_p1 = scmp.gt.s32.totalorder %s1044_s11, 0 }
  0x4d   : > { %s121_s16 = scalar_lea.hbm %s1245_s1, %s457_s13 }
  0x4e   : > { %s625_s17 = scalar_lea.hbm %s121_s16, 16  ;;  %p628_p7 = scmp.lt.u32.totalorder %s121_s16, %s1245_s1 }
  0x4f   : > { %p626_p6 = scmp.ne.s32.totalorder %s121_s16, %s625_s17  ;;  %p629_p10 = scmp.lt.u32.totalorder %s1059_s29, %s625_s17 }
  0x50   : > { %p631_p0 = scmp.lt.u32.totalorder %s625_s17, %s121_s16 }
  0x51   : > { %p630_p11 = por %p629_p10, %p628_p7 }
  0x53   : > { %p632_p2 = por %p631_p0, %p630_p11 }
  0x55   : > { %p633_p4 = pnand %p632_p2, %p626_p6 }
  0x57   : > { %636 = shalt.err (!%p633_p4)  }
  0x58   : > { %s637_s28 = scalar_lea.vmem %s1039_s6, 16  ;;  %s1068_s0 = scalar_lea.vmem %s1039_s6, 128 }
  0x59   : > { %p638_p3 = scmp.ne.s32.totalorder %s1039_s6, %s637_s28  ;;  %p642_p8 = scmp.lt.s32.totalorder %s1039_s6, %s1039_s6 }
  0x5a   : > { %p643_p9 = scmp.lt.s32.totalorder %s1068_s0, %s637_s28 }
  0x5c   : > { %p644_p12 = por %p643_p9, %p642_p8 }
  0x5e   : > { %p645_p5 = pnand %p644_p12, %p638_p3 }
  0x60   : > { %648 = shalt.err (!%p645_p5)  }
  0x61   : > { %132 = dma.hbm_to_vmem [thread:$0]  %s121_s16, 16, %s1039_s6, [#allocation3] }
  0x62   : > { %s1275_s12 = smov (!%p458_p13, %s136_s12), 63  ;;  %s907_s15 = smov [#allocation2 + $0x2]  }
  0x63   : > { %s157_s13 = scalar_select %p156_p1, %s1044_s11, 0 }
  0x64   : > { %s463_s14 = sshll.u32 %s1275_s12, 4  ;;  %s171_s17 = sshll.u32 %s907_s15, 4  ;;  %s1082_s17 = int_to_ptr.vmem [resolvable:$true] %s171_s17 }
  0x65   : > { %s140_s7 = scalar_lea.hbm %s1245_s1, %s463_s14 }
  0x66   : > { %s649_s9 = scalar_lea.hbm %s140_s7, 16  ;;  %p652_p6 = scmp.lt.u32.totalorder %s140_s7, %s1245_s1 }
  0x67   : > { %p650_p5 = scmp.ne.s32.totalorder %s140_s7, %s649_s9  ;;  %p653_p7 = scmp.lt.u32.totalorder %s1059_s29, %s649_s9 }
  0x68   : > { %p655_p13 = scmp.lt.u32.totalorder %s649_s9, %s140_s7 }
  0x69   : > { %p654_p10 = por %p653_p7, %p652_p6 }
  0x6b   : > { %p656_p11 = por %p655_p13, %p654_p10 }
  0x6d   : > { %p657_p1 = pnand %p656_p11, %p650_p5 }
  0x6f   : > { %660 = shalt.err (!%p657_p1)  }
  0x70   : > { %s661_s8 = scalar_lea.vmem %s1046_s10, 16  ;;  %p666_p2 = scmp.lt.s32.totalorder %s1046_s10, %s1039_s6 }
  0x71   : > { %p662_p0 = scmp.ne.s32.totalorder %s1046_s10, %s661_s8  ;;  %p667_p4 = scmp.lt.s32.totalorder %s1068_s0, %s661_s8 }
  0x73   : > { %p668_p3 = por %p667_p4, %p666_p2 }
  0x75   : > { %p669_p8 = pnand %p668_p3, %p662_p0 }
  0x77   : > { %672 = shalt.err (!%p669_p8)  }
  0x78   : > { %153 = dma.hbm_to_vmem [thread:$0]  %s140_s7, 16, %s1046_s10, [#allocation3 + $0x1] }
  0x79   : > { %p1261_p9 = scmp.lt.s32.totalorder %s1044_s11, 63  ;;  %s175_s20 = sadd.s32 3, %s1031_s21 }
  0x7a   : > { %s1097_s16 = sld [smem:[#allocation5 + %s175_s20]] }
  0x7b   : > { %s1277_s13 = smov (!%p1261_p9, %s157_s13), 63 }
  0x7c   : > { %s469_s12 = sshll.u32 %s1277_s13, 4 }
  0x7d   : > { %s161_s18 = scalar_lea.hbm %s1245_s1, %s469_s12 }
  0x7e   : > { %s673_s19 = scalar_lea.hbm %s161_s18, 16  ;;  %p676_p5 = scmp.lt.u32.totalorder %s161_s18, %s1245_s1 }
  0x7f   : > { %p674_p12 = scmp.ne.s32.totalorder %s161_s18, %s673_s19  ;;  %p677_p6 = scmp.lt.u32.totalorder %s1059_s29, %s673_s19 }
  0x80   : > { %p679_p10 = scmp.lt.u32.totalorder %s673_s19, %s161_s18 }
  0x81   : > { %p678_p7 = por %p677_p6, %p676_p5 }
  0x83   : > { %p680_p13 = por %p679_p10, %p678_p7 }
  0x85   : > { %p681_p11 = pnand %p680_p13, %p674_p12 }
  0x87   : > { %684 = shalt.err (!%p681_p11)  }
  0x88   : > { %s685_s10 = scalar_lea.vmem %s1082_s17, 16  ;;  %p690_p0 = scmp.lt.s32.totalorder %s1082_s17, %s1039_s6 }
  0x89   : > { %p686_p1 = scmp.ne.s32.totalorder %s1082_s17, %s685_s10  ;;  %p691_p2 = scmp.lt.s32.totalorder %s1068_s0, %s685_s10 }
  0x8b   : > { %p692_p4 = por %p691_p2, %p690_p0 }
  0x8d   : > { %p693_p3 = pnand %p692_p4, %p686_p1 }
  0x8f   : > { %696 = shalt.err (!%p693_p3)  }
  0x90   : > { %174 = dma.hbm_to_vmem [thread:$0]  %s161_s18, 16, %s1082_s17, [#allocation3 + $0x2] }
  0x91   : > { %s908_s11 = smov [#allocation2 + $0x3]   ;;  %s196_s7 = sadd.s32 4, %s1031_s21 }
  0x92   : > { %s192_s13 = sshll.u32 %s908_s11, 4  ;;  %s1113_s8 = sld [smem:[#allocation5 + %s196_s7]]  ;;  %s193_s13 = int_to_ptr.vmem [resolvable:$true] %s192_s13 }
  0x93   : > { %s909_s20 = smov [#allocation2 + $0x4]   ;;  %s217_s14 = sadd.s32 5, %s1031_s21 }
  0x94   : > { %s213_s12 = sshll.u32 %s909_s20, 4  ;;  %p177_p8 = scmp.gt.s32.totalorder %s1097_s16, 0  ;;  %s1121_s12 = int_to_ptr.vmem [resolvable:$true] %s213_s12 }
  0x95   : > { %p470_p9 = scmp.lt.s32.totalorder %s1097_s16, 63  ;;  %s1118_s15 = sld [smem:[#allocation5 + %s217_s14]] }
  0x96   : > { %s1279_s16 = smov (!%p177_p8, %s1097_s16), 0  ;;  %s238_s17 = sadd.s32 6, %s1031_s21 }
  0x97   : > { %s1281_s16 = smov (!%p470_p9, %s1279_s16), 63 }
  0x98   : > { %p198_p12 = scmp.gt.s32.totalorder %s1113_s8, 0  ;;  %s475_s18 = sshll.u32 %s1281_s16, 4 }
  0x99   : > { %s182_s28 = scalar_lea.hbm %s1245_s1, %s475_s18 }
  0x9a   : > { %s697_s10 = scalar_lea.hbm %s182_s28, 16  ;;  %p700_p10 = scmp.lt.u32.totalorder %s182_s28, %s1245_s1 }
  0x9b   : > { %p219_p6 = scmp.gt.s32.totalorder %s1118_s15, 0  ;;  %p698_p7 = scmp.ne.s32.totalorder %s182_s28, %s697_s10 }
  0x9c   : > { %p701_p13 = scmp.lt.u32.totalorder %s1059_s29, %s697_s10  ;;  %p703_p1 = scmp.lt.u32.totalorder %s697_s10, %s182_s28 }
  0x9e   : > { %p702_p11 = por %p701_p13, %p700_p10 }
  0xa0   : > { %p704_p0 = por %p703_p1, %p702_p11 }
  0xa2   : > { %p705_p2 = pnand %p704_p0, %p698_p7 }
  0xa4   : > { %708 = shalt.err (!%p705_p2)  }
  0xa5   : > { %s709_s20 = scalar_lea.vmem %s193_s13, 16  ;;  %p714_p3 = scmp.lt.s32.totalorder %s193_s13, %s1039_s6 }
  0xa6   : > { %p710_p4 = scmp.ne.s32.totalorder %s193_s13, %s709_s20  ;;  %p715_p8 = scmp.lt.s32.totalorder %s1068_s0, %s709_s20 }
  0xa8   : > { %p716_p9 = por %p715_p8, %p714_p3 }
  0xaa   : > { %p717_p5 = pnand %p716_p9, %p710_p4 }
  0xac   : > { %720 = shalt.err (!%p717_p5)  }
  0xad   : > { %195 = dma.hbm_to_vmem [thread:$0]  %s182_s28, 16, %s193_s13, [#allocation3 + $0x3] }
  0xae   : > { %s199_s16 = scalar_select %p198_p12, %s1113_s8, 0 }
  0xaf   : > { %s220_s14 = scalar_select %p219_p6, %s1118_s15, 0 }
  0xb0   : > { %p1262_p7 = scmp.lt.s32.totalorder %s1113_s8, 63  ;;  %p482_p10 = scmp.lt.s32.totalorder %s1118_s15, 63 }
  0xb1   : > { %s910_s18 = smov [#allocation2 + $0x5]   ;;  %s1145_s10 = sld [smem:[#allocation5 + %s238_s17]] }
  0xb2   : > { %s1283_s16 = smov (!%p1262_p7, %s199_s16), 63  ;;  %s234_s19 = sshll.u32 %s910_s18, 4  ;;  %s235_s19 = int_to_ptr.vmem [resolvable:$true] %s234_s19 }
  0xb3   : > { %s481_s9 = sshll.u32 %s1283_s16, 4 }
  0xb4   : > { %s203_s11 = scalar_lea.hbm %s1245_s1, %s481_s9 }
  0xb5   : > { %s721_s7 = scalar_lea.hbm %s203_s11, 16  ;;  %p724_p12 = scmp.lt.u32.totalorder %s203_s11, %s1245_s1 }
  0xb6   : > { %p722_p5 = scmp.ne.s32.totalorder %s203_s11, %s721_s7  ;;  %p725_p13 = scmp.lt.u32.totalorder %s1059_s29, %s721_s7 }
  0xb7   : > { %p727_p11 = scmp.lt.u32.totalorder %s721_s7, %s203_s11 }
  0xb8   : > { %p726_p6 = por %p725_p13, %p724_p12 }
  0xba   : > { %p728_p1 = por %p727_p11, %p726_p6 }
  0xbc   : > { %p729_p0 = pnand %p728_p1, %p722_p5 }
  0xbe   : > { %732 = shalt.err (!%p729_p0)  }
  0xbf   : > { %s733_s8 = scalar_lea.vmem %s1121_s12, 16  ;;  %p738_p4 = scmp.lt.s32.totalorder %s1121_s12, %s1039_s6 }
  0xc0   : > { %p734_p2 = scmp.ne.s32.totalorder %s1121_s12, %s733_s8  ;;  %p739_p3 = scmp.lt.s32.totalorder %s1068_s0, %s733_s8 }
  0xc2   : > { %p740_p8 = por %p739_p3, %p738_p4 }
  0xc4   : > { %p741_p9 = pnand %p740_p8, %p734_p2 }
  0xc6   : > { %744 = shalt.err (!%p741_p9)  }
  0xc7   : > { %216 = dma.hbm_to_vmem [thread:$0]  %s203_s11, 16, %s1121_s12, [#allocation3 + $0x4] }
  0xc8   : > { %s1285_s14 = smov (!%p482_p10, %s220_s14), 63  ;;  %s911_s2 = smov [#allocation2 + $0x6]  }
  0xc9   : > { %s255_s17 = sshll.u32 %s911_s2, 4  ;;  %s487_s16 = sshll.u32 %s1285_s14, 4  ;;  %s256_s17 = int_to_ptr.vmem [resolvable:$true] %s255_s17 }
  0xca   : > { %s259_s18 = sadd.s32 7, %s1031_s21  ;;  %s224_s28 = scalar_lea.hbm %s1245_s1, %s487_s16 }
  0xcb   : > { %p240_p7 = scmp.gt.s32.totalorder %s1145_s10, 0  ;;  %s745_s7 = scalar_lea.hbm %s224_s28, 16 }
  0xcc   : > { %p746_p5 = scmp.ne.s32.totalorder %s224_s28, %s745_s7  ;;  %p748_p12 = scmp.lt.u32.totalorder %s224_s28, %s1245_s1 }
  0xcd   : > { %p749_p13 = scmp.lt.u32.totalorder %s1059_s29, %s745_s7  ;;  %p751_p11 = scmp.lt.u32.totalorder %s745_s7, %s224_s28 }
  0xcf   : > { %p750_p6 = por %p749_p13, %p748_p12 }
  0xd1   : > { %p752_p10 = por %p751_p11, %p750_p6 }
  0xd3   : > { %p753_p1 = pnand %p752_p10, %p746_p5 }
  0xd5   : > { %756 = shalt.err (!%p753_p1)  }
  0xd6   : > { %s757_s12 = scalar_lea.vmem %s235_s19, 16  ;;  %p762_p2 = scmp.lt.s32.totalorder %s235_s19, %s1039_s6 }
  0xd7   : > { %p758_p0 = scmp.ne.s32.totalorder %s235_s19, %s757_s12  ;;  %p763_p4 = scmp.lt.s32.totalorder %s1068_s0, %s757_s12 }
  0xd9   : > { %p764_p3 = por %p763_p4, %p762_p2 }
  0xdb   : > { %p765_p8 = pnand %p764_p3, %p758_p0 }
  0xdd   : > { %768 = shalt.err (!%p765_p8)  }
  0xde   : > { %237 = dma.hbm_to_vmem [thread:$0]  %s224_s28, 16, %s235_s19, [#allocation3 + $0x5] }
  0xdf   : > { %s241_s15 = scalar_select %p240_p7, %s1145_s10, 0 }
  0xe0   : > { %p488_p9 = scmp.lt.s32.totalorder %s1145_s10, 63  ;;  %s260_s14 = sld [smem:[#allocation5 + %s259_s18]] }
  0xe2   : > { %s1287_s15 = smov (!%p488_p9, %s241_s15), 63 }
  0xe3   : > { %s493_s11 = sshll.u32 %s1287_s15, 4 }
  0xe4   : > { %s245_s9 = scalar_lea.hbm %s1245_s1, %s493_s11 }
  0xe5   : > { %s769_s13 = scalar_lea.hbm %s245_s9, 16  ;;  %p772_p12 = scmp.lt.u32.totalorder %s245_s9, %s1245_s1 }
  0xe6   : > { %p770_p5 = scmp.ne.s32.totalorder %s245_s9, %s769_s13  ;;  %p773_p13 = scmp.lt.u32.totalorder %s1059_s29, %s769_s13 }
  0xe7   : > { %p775_p11 = scmp.lt.u32.totalorder %s769_s13, %s245_s9 }
  0xe8   : > { %p774_p6 = por %p773_p13, %p772_p12 }
  0xea   : > { %p776_p10 = por %p775_p11, %p774_p6 }
  0xec   : > { %p777_p7 = pnand %p776_p10, %p770_p5 }
  0xee   : > { %780 = shalt.err (!%p777_p7)  }
  0xef   : > { %s781_s19 = scalar_lea.vmem %s256_s17, 16  ;;  %p786_p0 = scmp.lt.s32.totalorder %s256_s17, %s1039_s6 }
  0xf0   : > { %p782_p1 = scmp.ne.s32.totalorder %s256_s17, %s781_s19  ;;  %p787_p2 = scmp.lt.s32.totalorder %s1068_s0, %s781_s19 }
  0xf2   : > { %p788_p4 = por %p787_p2, %p786_p0 }
  0xf4   : > { %p789_p3 = pnand %p788_p4, %p782_p1 }
  0xf6   : > { %792 = shalt.err (!%p789_p3)  }
  0xf7   : > { %258 = dma.hbm_to_vmem [thread:$0]  %s245_s9, 16, %s256_s17, [#allocation3 + $0x6] }
  0xf8   : > { %p261_p8 = scmp.gt.s32.totalorder %s260_s14, 0  ;;  %p494_p9 = scmp.lt.s32.totalorder %s260_s14, 63 }
  0xf9   : > { %s912_s10 = smov [#allocation2 + $0x7]  }
  0xfa   : > { %s276_s18 = sshll.u32 %s912_s10, 4  ;;  %s1289_s14 = smov (!%p261_p8, %s260_s14), 0  ;;  %s277_s18 = int_to_ptr.vmem [resolvable:$true] %s276_s18 }
  0xfb   : > { %s1291_s14 = smov (!%p494_p9, %s1289_s14), 63 }
  0xfc   : > { %s499_s28 = sshll.u32 %s1291_s14, 4 }
  0xfd   : > { %s266_s15 = scalar_lea.hbm %s1245_s1, %s499_s28 }
  0xfe   : > { %s793_s11 = scalar_lea.hbm %s266_s15, 16  ;;  %p796_p12 = scmp.lt.u32.totalorder %s266_s15, %s1245_s1 }
  0xff   : > { %p794_p5 = scmp.ne.s32.totalorder %s266_s15, %s793_s11  ;;  %p797_p13 = scmp.lt.u32.totalorder %s1059_s29, %s793_s11 }
 0x100   : > { %p799_p11 = scmp.lt.u32.totalorder %s793_s11, %s266_s15 }
 0x101   : > { %p798_p6 = por %p797_p13, %p796_p12 }
 0x103   : > { %p800_p10 = por %p799_p11, %p798_p6 }
 0x105   : > { %p801_p7 = pnand %p800_p10, %p794_p5 }
 0x107   : > { %804 = shalt.err (!%p801_p7)  }
 0x108   : > { %s805_s17 = scalar_lea.vmem %s277_s18, 16  ;;  %p810_p0 = scmp.lt.s32.totalorder %s277_s18, %s1039_s6 }
 0x109   : > { %p806_p1 = scmp.ne.s32.totalorder %s277_s18, %s805_s17  ;;  %p811_p2 = scmp.lt.s32.totalorder %s1068_s0, %s805_s17 }
 0x10b   : > { %p812_p4 = por %p811_p2, %p810_p0 }
 0x10d   : > { %p813_p3 = pnand %p812_p4, %p806_p1 }
 0x10f   : > { %816 = shalt.err (!%p813_p3)  }
 0x110   : > { %279 = dma.hbm_to_vmem [thread:$0]  %s266_s15, 16, %s277_s18, [#allocation3 + $0x7] }
 0x111   : > { %s113_s14 = scalar_lea.vmem [#allocation9], %s1035_s26 }
 0x112   : > { %867 = dma.done.wait [#allocation3], 16 }
 0x113   : > { %868 = vsyncadd [#allocation3], 4294967280 }
 0x114   : > { %869 = dma.done.wait [#allocation3 + $0x1], 16 }
 0x115   : > { %870 = vsyncadd [#allocation3 + $0x1], 4294967280 }
 0x116   : > { %871 = dma.done.wait [#allocation3 + $0x2], 16 }
 0x117   : > { %872 = vsyncadd [#allocation3 + $0x2], 4294967280 }
 0x118   : > { %873 = dma.done.wait [#allocation3 + $0x3], 16 }
 0x119   : > { %874 = vsyncadd [#allocation3 + $0x3], 4294967280 }
 0x11a   : > { %875 = dma.done.wait [#allocation3 + $0x4], 16 }
 0x11b   : > { %876 = vsyncadd [#allocation3 + $0x4], 4294967280 }
 0x11c   : > { %877 = dma.done.wait [#allocation3 + $0x5], 16 }
 0x11d   : > { %878 = vsyncadd [#allocation3 + $0x5], 4294967280 }
 0x11e   : > { %879 = dma.done.wait [#allocation3 + $0x6], 16 }
 0x11f   : > { %880 = vsyncadd [#allocation3 + $0x6], 4294967280 }
 0x120   : > { %881 = dma.done.wait [#allocation3 + $0x7], 16 }
 0x121   : > { %882 = vsyncadd [#allocation3 + $0x7], 4294967280  ;;  %s315_s26 = sshll.u32 %s113_s14, 4  ;;  %v297_v0 = vld [vmem:[#allocation2] sm:$0xff]  ;;  %v298_v1 = vld [vmem:[#allocation6] sm:$0xff]  ;;  %s1200_s0 = scalar_lea.hbm %s1247_s3, %s1031_s21  ;;  %s1202_s26 = int_to_ptr.vmem [resolvable:$true] %s315_s26 }
 0x122   : > { %v299_v2 = vadd.f32 %v298_v1, %v297_v0  ;;  %s1263_s9 = sand.u32 1, %s893_s23   ;;  %s817_s7 = scalar_lea.vmem %s1202_s26, 128 }
 0x123   : > { %s302_s13 = scalar_lea.sflag [#allocation8], %s1263_s9  ;;  %p818_p8 = scmp.ne.s32.totalorder %s1202_s26, %s817_s7 }
 0x124   : > { %300 = vst [vmem:[%s113_s14] sm:$0xff] %v299_v2  ;;  %p1264_p9 = scmp.ne.s32.totalorder %s1253_s4, 0  ;;  %s913_s20 = smov [#allocation9]  }
 0x125   : > { %s821_s19 = sshll.u32 %s913_s20, 4  ;;  %s822_s19 = int_to_ptr.vmem [resolvable:$false] %s821_s19 }
 0x126   : > { %p819_p5 = pnand %p818_p8, %p1264_p9  ;;  %s823_s10 = scalar_lea.vmem %s822_s19, 256 }
 0x127   : > { %p824_p13 = scmp.lt.s32.totalorder %s1202_s26, %s822_s19  ;;  %p825_p6 = scmp.lt.s32.totalorder %s823_s10, %s817_s7 }
 0x128   : > { %p820_p12 = pneg %p819_p5 }
 0x129   : > { %p826_p11 = por %p825_p6, %p824_p13 }
 0x12b   : > { %p827_p10 = pnand %p826_p11, %p820_p12 }
 0x12d   : > { %830 = shalt.err (!%p827_p10)
}
 0x12e   : > { %s831_s21 = scalar_lea.hbm %s1200_s0, 128  ;;  %s835_s8 = scalar_lea.hbm %s1247_s3, 256 }
 0x12f   : > { %p832_p7 = scmp.ne.s32.totalorder %s1200_s0, %s831_s21  ;;  %p836_p2 = scmp.lt.u32.totalorder %s1200_s0, %s1247_s3 }
 0x130   : > { %p837_p4 = scmp.lt.u32.totalorder %s835_s8, %s831_s21  ;;  %p839_p8 = scmp.lt.u32.totalorder %s831_s21, %s1200_s0 }
 0x131   : > { %p833_p1 = pnand %p832_p7, %p1264_p9 }
 0x132   : > { %p838_p3 = por %p837_p4, %p836_p2 }
 0x133   : > { %p834_p0 = pneg %p833_p1 }
 0x134   : > { %p840_p5 = por %p839_p8, %p838_p3 }
 0x136   : > { %p841_p12 = pnand %p840_p5, %p834_p0 }
 0x138   : > { %844 = shalt.err (!%p841_p12)
}
 0x139   : > { %532 = dma.vmem_to_hbm [thread:$0]  (%p1264_p9), %s1202_s26, 128, %s1200_s0, %s302_s13  }
 0x13a PF: > { %p544_p13 = scmp.ge.s32.totalorder %s901_s25, 2  ;;  %s327_s11 = sand.u32 1, %s889_s22  }
 0x13b   : > { %p1265_p6 = scmp.ne.s32.totalorder %s1254_s5, 0  ;;  %s328_s2 = scalar_lea.sflag [#allocation8], %s327_s11 }
 0x13d   : > { %p539_p11 = pnand %p544_p13, %p1265_p6 }
 0x13f   : > { %884 = dma.done.wait (!%p539_p11), %s328_s2, 128  }
 0x140   : > { %886 = vsyncadd (!%p539_p11), %s328_s2, 4294967168  ;;  %p18_p10 = scmp.ge.s32.totalorder %s971_s27, 4   ;;  %s1266_s22 = smov %s893_s23 }
 0x141   : > { %s1267_s23 = smov %s897_s24  ;;  %s1268_s24 = smov %s982_s30 }
 0x142   : > { %s1269_s25 = smov %s971_s27  ;;  %20 = sbr.rel (!%p18_p10) target bundleno = 16 (0x10), region = 122 }
 0x149   :  { %333 = vsyncpa [#allocation7], 1 }
 0x14a   :  { %335 = vsyncpa [#allocation7 + $0x1], 1 }
 0x14b   :  { %336 = vsyncpa [#allocation8], 1 }
 0x14c   :  { %338 = vsyncpa [#allocation8 + $0x1], 1 }
 0x14d   :  { %339 = vsyncmov [#allocation3] }
 0x150   :  { %s340_s25 = vpop.sfrf %339 }
 0x151   :  { %p504_p9 = scmp.ne.s32.totalorder %s340_s25, 0 }
 0x153   :  { %344 = shalt.err (%p504_p9)  }
 0x154   :  { %346 = vsyncmov [#allocation3 + $0x1] }
 0x157   :  { %s347_s4 = vpop.sfrf %346 }
 0x158   :  { %p505_p7 = scmp.ne.s32.totalorder %s347_s4, 0 }
 0x15a   :  { %351 = shalt.err (%p505_p7)  }
 0x15b   :  { %353 = vsyncmov [#allocation3 + $0x2] }
 0x15e   :  { %s354_s5 = vpop.sfrf %353 }
 0x15f   :  { %p506_p1 = scmp.ne.s32.totalorder %s354_s5, 0 }
 0x161   :  { %358 = shalt.err (%p506_p1)  }
 0x162   :  { %360 = vsyncmov [#allocation3 + $0x3] }
 0x165   :  { %s361_s30 = vpop.sfrf %360 }
 0x166   :  { %p507_p0 = scmp.ne.s32.totalorder %s361_s30, 0 }
 0x168   :  { %365 = shalt.err (%p507_p0)  }
 0x169   :  { %367 = vsyncmov [#allocation3 + $0x4] }
 0x16c   :  { %s368_s1 = vpop.sfrf %367 }
 0x16d   :  { %p508_p2 = scmp.ne.s32.totalorder %s368_s1, 0 }
 0x16f   :  { %372 = shalt.err (%p508_p2)  }
 0x170   :  { %374 = vsyncmov [#allocation3 + $0x5] }
 0x173   :  { %s375_s3 = vpop.sfrf %374 }
 0x174   :  { %p509_p4 = scmp.ne.s32.totalorder %s375_s3, 0 }
 0x176   :  { %379 = shalt.err (%p509_p4)  }
 0x177   :  { %381 = vsyncmov [#allocation3 + $0x6] }
 0x17a   :  { %s382_s22 = vpop.sfrf %381 }
 0x17b   :  { %p510_p3 = scmp.ne.s32.totalorder %s382_s22, 0 }
 0x17d   :  { %386 = shalt.err (%p510_p3)  }
 0x17e   :  { %388 = vsyncmov [#allocation3 + $0x7] }
 0x181   :  { %s389_s23 = vpop.sfrf %388 }
 0x182   :  { %p511_p8 = scmp.ne.s32.totalorder %s389_s23, 0 }
 0x184   :  { %393 = shalt.err (%p511_p8)  }

</bundles_post_ra>
